<compile_context>
chip_gen: v7x
topology: tpu7x:2x2x1
jax: 0.10.0
libtpu: 0.0.40
codegen_flags: <defaults>
</compile_context>

<pallas_src>
import jax
import jax.numpy as jnp
from jax.experimental import pallas as pl
from jax.experimental.pallas import tpu as pltpu


def _interaction_kernel_small_c(x1_ref, x2_ref, w1_ref, w2_ref, shift_ref,
                                out_ref):
    """VPU path for small C (<= 8): unrolled scalar-broadcast FMAs (no MXU)."""
    C, T = x1_ref.shape
    x1 = x1_ref[...].astype(jnp.float32)          # (C, T)
    x2 = x2_ref[...].astype(jnp.float32)          # (C, T)
    w1 = w1_ref[...]                              # (C, C)  (BN-folded)
    w2 = w2_ref[...]                              # (C, C)
    s = jnp.broadcast_to(shift_ref[...], (C, T))  # (C, T)  folded bias+BN shift
    for c in range(C):                            # static unroll, C is tiny
        s = s + w1[:, c:c + 1] * x1[c:c + 1, :] + w2[:, c:c + 1] * x2[c:c + 1, :]
    mask = jax.nn.sigmoid(s)
    out_ref[...] = (x1 + x2 * mask).astype(out_ref.dtype)


def _interaction_kernel_matmul(x1_ref, x2_ref, w1_ref, w2_ref, shift_ref,
                               out_ref):
    """MXU path for C > 8: 1x1 conv == per-pixel channel mix.

    Activations are fed to the MXU in their native dtype (bf16 stays bf16,
    weights are pre-cast in the wrapper); only the sigmoid epilogue is f32.
    """
    x1 = x1_ref[...]                              # (C, T), native dtype
    x2 = x2_ref[...]
    s = (jnp.dot(w1_ref[...], x1, preferred_element_type=jnp.float32)
         + jnp.dot(w2_ref[...], x2, preferred_element_type=jnp.float32)
         + shift_ref[...])                        # (C, T) f32; shift (C, 1)
    mask = jax.nn.sigmoid(s)
    out_ref[...] = (x1.astype(jnp.float32)
                    + x2.astype(jnp.float32) * mask).astype(out_ref.dtype)


def _round_up(a, m):
    return ((a + m - 1) // m) * m


def _select_tile_hw(C, HW, N, itemsize, vmem_budget, const_bytes):
    """Lane-dense HW tile: ~2 MiB per streamed block, VMEM-budget bounded."""
    if HW <= 128:
        return HW                                 # full-dim block is allowed
    hw_floor = (HW // 128) * 128                  # largest 128-mult <= HW
    # ~2 MiB per streamed input block keeps the ~0.35 us per-grid-step
    # overhead negligible (mem-bound kernel), on v5e/v6e as well as v7x.
    target_bytes = 2 * 1024 * 1024
    tile = max(128, ((target_bytes // (C * itemsize)) // 128) * 128)
    # VMEM cap: x1/x2/out blocks double-buffered + resident weights + headroom.
    avail = max(0, vmem_budget - const_bytes - (2 << 20))
    max_tile = max(128, ((avail // (6 * C * itemsize)) // 128) * 128)
    tile = min(tile, max_tile, hw_floor)
    # With a single batch image, keep >= 2 HW tiles so both v7x cores work.
    if N == 1 and tile >= HW and HW > 128:
        tile = max(128, ((hw_floor // 2) // 128) * 128)
    return tile


def interaction_module(x1, x2, params):
    """x1, x2: (N, C, H, W).  Returns (N, C, H, W)."""
    N, C, H, W = x1.shape
    HW = H * W
    itemsize = x1.dtype.itemsize

    # NCHW -> (N, C, HW): free reshape, no transposes / extra HBM traffic.
    x1_f = x1.reshape(N, C, HW)
    x2_f = x2.reshape(N, C, HW)

    # Fold conv weight (C, 2C, 1, 1), conv bias and eval-mode BN into
    # per-output-channel-scaled weights + a single shift vector:
    #   mask = sigmoid(w1' @ x1 + w2' @ x2 + shift')
    eps = 1e-5
    w = params["conv_w"].reshape(C, 2 * C).astype(jnp.float32)
    scale = (params["bn_gamma"] /
             jnp.sqrt(params["bn_var"] + eps)).astype(jnp.float32)   # (C,)
    w1 = w[:, :C] * scale[:, None]                                   # (C, C)
    w2 = w[:, C:] * scale[:, None]                                   # (C, C)
    shift = (params["conv_b"].astype(jnp.float32) * scale
             + params["bn_beta"].astype(jnp.float32)
             - params["bn_mean"].astype(jnp.float32) * scale).reshape(C, 1)

    # Feed the MXU in the activation dtype (no f32 upcast before the dot).
    if x1.dtype == jnp.bfloat16:
        w_dtype, w_itemsize = jnp.bfloat16, 2
    else:
        w_dtype, w_itemsize = jnp.float32, 4
    w1 = w1.astype(w_dtype)
    w2 = w2.astype(w_dtype)

    # VPU/MXU crossover (feedback: ~8; the unrolled path costs 2C VALU
    # mul+adds per output element, the MXU slot is free in a mem-bound kernel).
    use_mxu = C > 8
    kernel = _interaction_kernel_matmul if use_mxu else _interaction_kernel_small_c

    # Resident constants: single-buffer for large C (block index never moves).
    single_buffer_consts = C >= 128
    n_const_bufs = 1 if single_buffer_consts else 2
    const_bytes = n_const_bufs * (2 * C * C * w_itemsize + C * 4)

    # Generation-aware VMEM budget: ~75% of physical (≈48 MiB on v7x,
    # ≈96 MiB on v5e/v6e), leaving headroom for compiler-internal scratch.
    try:
        vmem_cap = int(pltpu.get_tpu_info().vmem_capacity_bytes)
    except Exception:
        vmem_cap = 64 * 1024 * 1024               # v7x-safe fallback
    vmem_budget = (vmem_cap * 3) // 4

    tile_hw = _select_tile_hw(C, HW, N, itemsize, vmem_budget, const_bytes)
    grid = (N, pl.cdiv(HW, tile_hw))              # ragged edge block is masked

    x_spec = pl.BlockSpec((None, C, tile_hw), lambda n, t: (n, 0, t))
    if single_buffer_consts:
        w_spec = pl.BlockSpec((C, C), lambda n, t: (0, 0),
                              pipeline_mode=pl.Buffered(1))
        s_spec = pl.BlockSpec((C, 1), lambda n, t: (0, 0),
                              pipeline_mode=pl.Buffered(1))
    else:
        w_spec = pl.BlockSpec((C, C), lambda n, t: (0, 0))
        s_spec = pl.BlockSpec((C, 1), lambda n, t: (0, 0))

    out_flat = pl.pallas_call(
        kernel,
        out_shape=jax.ShapeDtypeStruct((N, C, HW), x1.dtype),
        grid_spec=pltpu.PrefetchScalarGridSpec(
            num_scalar_prefetch=0,
            grid=grid,
            in_specs=[x_spec,      # x1
                      x_spec,      # x2
                      w_spec,      # w1' (BN-folded)
                      w_spec,      # w2' (BN-folded)
                      s_spec],     # shift' (folded bias + BN shift)
            out_specs=pl.BlockSpec((None, C, tile_hw), lambda n, t: (n, 0, t)),
        ),
        compiler_params=pltpu.CompilerParams(
            dimension_semantics=("parallel", "parallel"),
            vmem_limit_bytes=int(vmem_budget)),
    )(x1_f, x2_f, w1, w2, shift)

    return out_flat.reshape(N, C, H, W)


def _reference(x1, x2, params):
    """Pure-JAX reference mirroring the PyTorch forward (eval-mode BN)."""
    N, C, H, W = x1.shape
    xin = jnp.concatenate([x1, x2], axis=1)                       # (N, 2C, H, W)
    w = params["conv_w"].reshape(C, 2 * C)
    conv = jnp.einsum("oc,nchw->nohw", w, xin) + params["conv_b"][None, :, None, None]
    eps = 1e-5
    bn = ((conv - params["bn_mean"][None, :, None, None]) /
          jnp.sqrt(params["bn_var"] + eps)[None, :, None, None]
          * params["bn_gamma"][None, :, None, None]
          + params["bn_beta"][None, :, None, None])
    mask = jax.nn.sigmoid(bn)
    return x1 + x2 * mask


def init_params(key, num_channels):
    C = num_channels
    k_w, k_b, k_m, k_v = jax.random.split(key, 4)
    fan_in = 2 * C  # kernel 1x1
    bound = 1.0 / jnp.sqrt(fan_in)
    return {
        # Conv2d(2C -> C, 1x1): weight (C, 2C, 1, 1), bias (C,)
        "conv_w": jax.random.uniform(k_w, (C, 2 * C, 1, 1), jnp.float32,
                                     -bound, bound),
        "conv_b": jax.random.uniform(k_b, (C,), jnp.float32, -bound, bound),
        # BatchNorm2d(C): gamma=1, beta=0 (PyTorch default init);
        # running stats initialized deterministically (non-trivial values).
        "bn_gamma": jnp.ones((C,), jnp.float32),
        "bn_beta": jnp.zeros((C,), jnp.float32),
        "bn_mean": 0.1 * jax.random.normal(k_m, (C,), jnp.float32),
        "bn_var": 1.0 + 0.1 * jax.random.uniform(k_v, (C,), jnp.float32),
    }


if __name__ == "__main__":
    key = jax.random.PRNGKey(0)
    k1, k2, kp = jax.random.split(key, 3)

    N, C, H, W = 2, 4, 16, 16
    x1 = jax.random.normal(k1, (N, C, H, W), jnp.float32)
    x2 = jax.random.normal(k2, (N, C, H, W), jnp.float32)
    params = init_params(kp, C)

    out = interaction_module(x1, x2, params)
    out = jax.block_until_ready(out)

    ref = _reference(x1, x2, params)
    assert out.shape == (N, C, H, W)
    assert jnp.allclose(out, ref, atol=1e-5, rtol=1e-5), "mismatch vs reference"

    print("KERNEL_OK")
</pallas_src>

<mosaic_0001>
module attributes {stable_mosaic.version = 11 : i64} {
  func.func @_interaction_kernel_small_c(%arg0: i32, %arg1: i32, %arg2: memref<1x4x256xf32, #tpu.memory_space<vmem>>, %arg3: memref<1x4x256xf32, #tpu.memory_space<vmem>>, %arg4: memref<4x4xf32, #tpu.memory_space<vmem>>, %arg5: memref<4x4xf32, #tpu.memory_space<vmem>>, %arg6: memref<4x1xf32, #tpu.memory_space<vmem>>, %arg7: memref<1x4x256xf32, #tpu.memory_space<vmem>>) attributes {dimension_semantics = [#tpu.dimension_semantics<parallel>, #tpu.dimension_semantics<parallel>], iteration_bounds = array<i64: 2, 1>, scalar_prefetch = 0 : i64, scratch_operands = 0 : i64, tpu.core_type = #tpu.core_type<tc>, window_params = [{transform_indices = @transform_0, window_bounds = array<i64: 1, 4, 256>}, {transform_indices = @transform_1, window_bounds = array<i64: 1, 4, 256>}, {pipeline_mode = #tpu.pipeline_mode<synchronous>, transform_indices = @transform_2, window_bounds = array<i64: 4, 4>}, {pipeline_mode = #tpu.pipeline_mode<synchronous>, transform_indices = @transform_3, window_bounds = array<i64: 4, 4>}, {pipeline_mode = #tpu.pipeline_mode<synchronous>, transform_indices = @transform_4, window_bounds = array<i64: 4, 1>}, {transform_indices = @transform_5, window_bounds = array<i64: 1, 4, 256>}]} {
    %c0 = arith.constant 0 : index
    %c0_0 = arith.constant 0 : index
    %c0_1 = arith.constant 0 : index
    %0 = vector.load %arg2[%c0, %c0_0, %c0_1] : memref<1x4x256xf32, #tpu.memory_space<vmem>>, vector<1x4x256xf32>
    %1 = vector.shape_cast %0 : vector<1x4x256xf32> to vector<4x256xf32>
    %c0_2 = arith.constant 0 : index
    %c0_3 = arith.constant 0 : index
    %c0_4 = arith.constant 0 : index
    %2 = vector.load %arg3[%c0_2, %c0_3, %c0_4] : memref<1x4x256xf32, #tpu.memory_space<vmem>>, vector<1x4x256xf32>
    %3 = vector.shape_cast %2 : vector<1x4x256xf32> to vector<4x256xf32>
    %c0_5 = arith.constant 0 : index
    %c0_6 = arith.constant 0 : index
    %4 = vector.load %arg4[%c0_5, %c0_6] : memref<4x4xf32, #tpu.memory_space<vmem>>, vector<4x4xf32>
    %c0_7 = arith.constant 0 : index
    %c0_8 = arith.constant 0 : index
    %5 = vector.load %arg5[%c0_7, %c0_8] : memref<4x4xf32, #tpu.memory_space<vmem>>, vector<4x4xf32>
    %c0_9 = arith.constant 0 : index
    %c0_10 = arith.constant 0 : index
    %6 = vector.load %arg6[%c0_9, %c0_10] : memref<4x1xf32, #tpu.memory_space<vmem>>, vector<4x1xf32>
    %7 = vector.shape_cast %6 : vector<4x1xf32> to vector<4x1xf32>
    %8 = vector.broadcast %7 : vector<4x1xf32> to vector<4x256xf32>
    %9 = vector.extract_strided_slice %4 {offsets = [0, 0], sizes = [4, 1], strides = [1, 1]} : vector<4x4xf32> to vector<4x1xf32>
    %10 = vector.extract_strided_slice %1 {offsets = [0, 0], sizes = [1, 256], strides = [1, 1]} : vector<4x256xf32> to vector<1x256xf32>
    %11 = vector.broadcast %9 : vector<4x1xf32> to vector<4x256xf32>
    %12 = vector.broadcast %10 : vector<1x256xf32> to vector<4x256xf32>
    %13 = arith.mulf %11, %12 : vector<4x256xf32>
    %14 = arith.addf %8, %13 : vector<4x256xf32>
    %15 = vector.extract_strided_slice %5 {offsets = [0, 0], sizes = [4, 1], strides = [1, 1]} : vector<4x4xf32> to vector<4x1xf32>
    %16 = vector.extract_strided_slice %3 {offsets = [0, 0], sizes = [1, 256], strides = [1, 1]} : vector<4x256xf32> to vector<1x256xf32>
    %17 = vector.broadcast %15 : vector<4x1xf32> to vector<4x256xf32>
    %18 = vector.broadcast %16 : vector<1x256xf32> to vector<4x256xf32>
    %19 = arith.mulf %17, %18 : vector<4x256xf32>
    %20 = arith.addf %14, %19 : vector<4x256xf32>
    %21 = vector.extract_strided_slice %4 {offsets = [0, 1], sizes = [4, 1], strides = [1, 1]} : vector<4x4xf32> to vector<4x1xf32>
    %22 = vector.extract_strided_slice %1 {offsets = [1, 0], sizes = [1, 256], strides = [1, 1]} : vector<4x256xf32> to vector<1x256xf32>
    %23 = vector.broadcast %21 : vector<4x1xf32> to vector<4x256xf32>
    %24 = vector.broadcast %22 : vector<1x256xf32> to vector<4x256xf32>
    %25 = arith.mulf %23, %24 : vector<4x256xf32>
    %26 = arith.addf %20, %25 : vector<4x256xf32>
    %27 = vector.extract_strided_slice %5 {offsets = [0, 1], sizes = [4, 1], strides = [1, 1]} : vector<4x4xf32> to vector<4x1xf32>
    %28 = vector.extract_strided_slice %3 {offsets = [1, 0], sizes = [1, 256], strides = [1, 1]} : vector<4x256xf32> to vector<1x256xf32>
    %29 = vector.broadcast %27 : vector<4x1xf32> to vector<4x256xf32>
    %30 = vector.broadcast %28 : vector<1x256xf32> to vector<4x256xf32>
    %31 = arith.mulf %29, %30 : vector<4x256xf32>
    %32 = arith.addf %26, %31 : vector<4x256xf32>
    %33 = vector.extract_strided_slice %4 {offsets = [0, 2], sizes = [4, 1], strides = [1, 1]} : vector<4x4xf32> to vector<4x1xf32>
    %34 = vector.extract_strided_slice %1 {offsets = [2, 0], sizes = [1, 256], strides = [1, 1]} : vector<4x256xf32> to vector<1x256xf32>
    %35 = vector.broadcast %33 : vector<4x1xf32> to vector<4x256xf32>
    %36 = vector.broadcast %34 : vector<1x256xf32> to vector<4x256xf32>
    %37 = arith.mulf %35, %36 : vector<4x256xf32>
    %38 = arith.addf %32, %37 : vector<4x256xf32>
    %39 = vector.extract_strided_slice %5 {offsets = [0, 2], sizes = [4, 1], strides = [1, 1]} : vector<4x4xf32> to vector<4x1xf32>
    %40 = vector.extract_strided_slice %3 {offsets = [2, 0], sizes = [1, 256], strides = [1, 1]} : vector<4x256xf32> to vector<1x256xf32>
    %41 = vector.broadcast %39 : vector<4x1xf32> to vector<4x256xf32>
    %42 = vector.broadcast %40 : vector<1x256xf32> to vector<4x256xf32>
    %43 = arith.mulf %41, %42 : vector<4x256xf32>
    %44 = arith.addf %38, %43 : vector<4x256xf32>
    %45 = vector.extract_strided_slice %4 {offsets = [0, 3], sizes = [4, 1], strides = [1, 1]} : vector<4x4xf32> to vector<4x1xf32>
    %46 = vector.extract_strided_slice %1 {offsets = [3, 0], sizes = [1, 256], strides = [1, 1]} : vector<4x256xf32> to vector<1x256xf32>
    %47 = vector.broadcast %45 : vector<4x1xf32> to vector<4x256xf32>
    %48 = vector.broadcast %46 : vector<1x256xf32> to vector<4x256xf32>
    %49 = arith.mulf %47, %48 : vector<4x256xf32>
    %50 = arith.addf %44, %49 : vector<4x256xf32>
    %51 = vector.extract_strided_slice %5 {offsets = [0, 3], sizes = [4, 1], strides = [1, 1]} : vector<4x4xf32> to vector<4x1xf32>
    %52 = vector.extract_strided_slice %3 {offsets = [3, 0], sizes = [1, 256], strides = [1, 1]} : vector<4x256xf32> to vector<1x256xf32>
    %53 = vector.broadcast %51 : vector<4x1xf32> to vector<4x256xf32>
    %54 = vector.broadcast %52 : vector<1x256xf32> to vector<4x256xf32>
    %55 = arith.mulf %53, %54 : vector<4x256xf32>
    %56 = arith.addf %50, %55 : vector<4x256xf32>
    %57 = arith.negf %56 : vector<4x256xf32>
    %58 = math.exp %57 : vector<4x256xf32>
    %cst = arith.constant 1.000000e+00 : f32
    %59 = vector.broadcast %cst : f32 to vector<4x256xf32>
    %60 = arith.addf %59, %58 : vector<4x256xf32>
    %61 = arith.divf %59, %60 : vector<4x256xf32>
    %62 = arith.mulf %3, %61 : vector<4x256xf32>
    %63 = arith.addf %1, %62 : vector<4x256xf32>
    %c0_11 = arith.constant 0 : index
    %c0_12 = arith.constant 0 : index
    %c0_13 = arith.constant 0 : index
    %64 = vector.load %arg7[%c0_11, %c0_12, %c0_13] : memref<1x4x256xf32, #tpu.memory_space<vmem>>, vector<1x4x256xf32>
    %65 = vector.shape_cast %64 : vector<1x4x256xf32> to vector<4x256xf32>
    %66 = vector.shape_cast %63 : vector<4x256xf32> to vector<1x4x256xf32>
    tpu.vector_store %arg7[%c0_11, %c0_12, %c0_13], %66 {strides = array<i32>} : memref<1x4x256xf32, #tpu.memory_space<vmem>>, vector<1x4x256xf32>,
    return
  }
  func.func @transform_0(%arg0: i32, %arg1: i32) -> (i32, i32, i32) {
    %c0_i32 = arith.constant 0 : i32
    %c0_i32_0 = arith.constant 0 : i32
    return %arg0, %c0_i32, %arg1 : i32, i32, i32
  }
  func.func @transform_1(%arg0: i32, %arg1: i32) -> (i32, i32, i32) {
    %c0_i32 = arith.constant 0 : i32
    %c0_i32_0 = arith.constant 0 : i32
    return %arg0, %c0_i32, %arg1 : i32, i32, i32
  }
  func.func @transform_2(%arg0: i32, %arg1: i32) -> (i32, i32) {
    %c0_i32 = arith.constant 0 : i32
    %c0_i32_0 = arith.constant 0 : i32
    %c0_i32_1 = arith.constant 0 : i32
    return %c0_i32, %c0_i32_0 : i32, i32
  }
  func.func @transform_3(%arg0: i32, %arg1: i32) -> (i32, i32) {
    %c0_i32 = arith.constant 0 : i32
    %c0_i32_0 = arith.constant 0 : i32
    %c0_i32_1 = arith.constant 0 : i32
    return %c0_i32, %c0_i32_0 : i32, i32
  }
  func.func @transform_4(%arg0: i32, %arg1: i32) -> (i32, i32) {
    %c0_i32 = arith.constant 0 : i32
    %c0_i32_0 = arith.constant 0 : i32
    %c0_i32_1 = arith.constant 0 : i32
    return %c0_i32, %c0_i32_0 : i32, i32
  }
  func.func @transform_5(%arg0: i32, %arg1: i32) -> (i32, i32, i32) {
    %c0_i32 = arith.constant 0 : i32
    %c0_i32_0 = arith.constant 0 : i32
    return %arg0, %c0_i32, %arg1 : i32, i32, i32
  }
}

</mosaic_0001>

<bundles_post_ra>
// kernel: tpu_custom_call.1
= control target key start
LH: loop header
LB: loop body
LE: loop exit
PB: predicated region body
PF: predicated region fallthrough
CT: control target
= control target key end

     0   :  { %10 = vsyncpa [#allocation3], 0  ;;  %s1237_s0 = inlined_call_operand.hbm [shape: f32[2,4,256], index: 0, kind: input, shape index: {}]   ;;  %s1238_s1 = inlined_call_operand.hbm [shape: f32[2,4,256], index: 1, kind: input, shape index: {}]   ;;  %s1239_s2 = inlined_call_operand.vmem [shape: f32[4,4], index: 2, kind: input, shape index: {}]   ;;  %s1240_s3 = inlined_call_operand.vmem [shape: f32[4,4], index: 3, kind: input, shape index: {}]   ;;  %s1241_s4 = inlined_call_operand.vmem [shape: f32[4,1], index: 4, kind: input, shape index: {}]   ;;  %s1242_s5 = inlined_call_operand.hbm [shape: f32[2,4,256], index: 5, kind: output, shape index: {}]  }
   0x1   :  { %12 = vsyncpa [#allocation3 + $0x1], 0 }
   0x2   :  { %13 = vsyncpa [#allocation6], 0 }
   0x3   :  { %15 = vsyncpa [#allocation6 + $0x1], 0 }
   0x4   :  { %16 = vsyncpa [#allocation4], 0 }
   0x5   :  { %18 = vsyncpa [#allocation4 + $0x1], 0  ;;  %s967_s18 = smov 0   ;;  %s969_s19 = smov 0  }
   0x6   :  { %s971_s20 = smov 0   ;;  %s973_s21 = smov 0  }
   0x7   :  { %s975_s22 = smov 0   ;;  %s977_s23 = smov 0  }
   0x8 LB: > { %s672_s24 = sadd.s32 4294967295, %s928_s23   ;;  %s673_s25 = sadd.s32 4294967294, %s928_s23   ;;  %s928_s23 = sphi %s977_s23, %s24_s23   ;;  %s924_s22 = sphi %s975_s22, %s1262_s22   ;;  %s920_s21 = sphi %s973_s21, %s1261_s21   ;;  %s916_s20 = sphi %s971_s20, %s1260_s20   ;;  %s912_s19 = sphi %s969_s19, %s1259_s19   ;;  %s908_s18 = sphi %s967_s18, %s1258_s18  }
   0x9   : > { %s36_s26 = sadd.s32 1, %s924_s22  ;;  %s45_s27 = sadd.s32 1, %s916_s20 }
   0xa   : > { %p38_p0 = scmp.ge.s32.totalorder %s36_s26, 2  ;;  %p52_p1 = scmp.ne.s32.totalorder %s916_s20, %s912_s19 }
   0xb   : > { %p53_p2 = scmp.eq.s32.totalorder %s928_s23, 0  ;;  %p58_p3 = scmp.ne.s32.totalorder %s912_s19, %s908_s18 }
   0xc   : > { %s1264_s26 = smov (%p38_p0, %s36_s26), 0  ;;  %p59_p5 = scmp.eq.s32.totalorder %s672_s24, 0 }
   0xd   : > { %p1008_p4 = por %p53_p2, %p52_p1  ;;  %s40_s29 = ssub.s32 %s924_s22, %s1264_s26 }
   0xe   : > { %p175_p6 = scmp.eq.s32.totalorder %s672_s24, 1  ;;  %p43_p7 = scmp.eq.s32.totalorder %s40_s29, 0 }
   0xf   : > { %p1014_p8 = por %p59_p5, %p58_p3  ;;  %p181_p10 = scmp.eq.s32.totalorder %s673_s25, 1 }
  0x10   : > { %p1018_p9 = por %p175_p6, %p52_p1  ;;  %p713_p13 = scmp.lt.s32.totalorder %s928_s23, 2 }
  0x11   : > { %s1246_s30 = scalar_select %p1014_p8, 1, 0 }
  0x12   : > { %s1247_s6 = scalar_select %p1018_p9, 1, 0 }
  0x13   : > { %s1023_s7 = scalar_select %p43_p7, %s916_s20, %s45_s27  }
  0x14   : > { %p1025_p11 = por %p181_p10, %p58_p3  ;;  %s1032_s9 = sand.u32 1, %s916_s20  }
  0x15   : > { %s676_s10 = sshll.u32 %s1032_s9, 3  ;;  %s693_s11 = sshll.u32 %s924_s22, 7 }
  0x16   : > { %s1248_s8 = scalar_select %p1025_p11, 1, 0 }
  0x17   : > { %s1041_s14 = scalar_lea.hbm %s1237_s0, %s693_s11  ;;  %s214_s15 = scalar_lea.vmem [#allocation2], %s676_s10 }
  0x18   : > { %s224_s16 = sshll.u32 %s214_s15, 4  ;;  %p1049_p0 = pnand %p713_p13, %p1008_p4  ;;  %s1045_s16 = int_to_ptr.vmem [resolvable:$true] %s224_s16 }
  0x19   : > { %s211_s24 = scalar_lea.sflag [#allocation3], %s1032_s9  ;;  %s782_s25 = scalar_lea.hbm %s1041_s14, 128 }
  0x1a   : > { %p783_p3 = scmp.ne.s32.totalorder %s1041_s14, %s782_s25  ;;  %p784_p5 = pneg %p1049_p0 }
  0x1b   : > { %s787_s28 = scalar_lea.hbm %s1237_s0, 256  ;;  %p788_p4 = scmp.lt.u32.totalorder %s1041_s14, %s1237_s0 }
  0x1c   : > { %p785_p6 = pnand %p784_p5, %p783_p3  ;;  %p789_p10 = scmp.lt.u32.totalorder %s787_s28, %s782_s25 }
  0x1d   : > { %p791_p12 = scmp.lt.u32.totalorder %s782_s25, %s1041_s14 }
  0x1e   : > { %p786_p7 = pneg %p785_p6  ;;  %p790_p13 = por %p789_p10, %p788_p4 }
  0x20   : > { %p792_p1 = por %p791_p12, %p790_p13 }
  0x22   : > { %p793_p2 = pnand %p792_p1, %p786_p7 }
  0x24   : > { %796 = shalt.err (!%p793_p2)
}
  0x25   : > { %s797_s15 = scalar_lea.vmem %s1045_s16, 128  ;;  %s930_s27 = smov [#allocation2]  }
  0x26   : > { %p798_p3 = scmp.ne.s32.totalorder %s1045_s16, %s797_s15  ;;  %s802_s29 = sshll.u32 %s930_s27, 4  ;;  %s803_s29 = int_to_ptr.vmem [resolvable:$false] %s802_s29 }
  0x27   : > { %s804_s12 = scalar_lea.vmem %s803_s29, 256  ;;  %p805_p9 = scmp.lt.s32.totalorder %s1045_s16, %s803_s29 }
  0x28   : > { %p800_p6 = pnand %p798_p3, %p784_p5  ;;  %p806_p4 = scmp.lt.s32.totalorder %s804_s12, %s797_s15 }
  0x2a   : > { %p801_p11 = pneg %p800_p6  ;;  %p807_p10 = por %p806_p4, %p805_p9 }
  0x2c   : > { %p808_p12 = pnand %p807_p10, %p801_p11 }
  0x2e   : > { %811 = shalt.err (!%p808_p12)
}
  0x2f   : > { %705 = dma.hbm_to_vmem [thread:$0]  (!%p1049_p0), %s1041_s14, 128, %s1045_s16, %s211_s24  }
  0x30   : > { %p1250_p1 = scmp.lt.s32.totalorder %s928_s23, 3  ;;  %p1251_p2 = scmp.ge.s32.totalorder %s928_s23, 1 }
  0x31   : > { %s1094_s15 = scalar_lea.hbm %s1238_s1, %s693_s11  ;;  %s235_s27 = scalar_lea.vmem [#allocation5], %s676_s10 }
  0x32   : > { %p1085_p7 = pnand %p1251_p2, %p1250_p1  ;;  %s245_s29 = sshll.u32 %s235_s27, 4  ;;  %s246_s29 = int_to_ptr.vmem [resolvable:$true] %s245_s29 }
  0x33   : > { %s232_s14 = scalar_lea.sflag [#allocation6], %s1032_s9  ;;  %s812_s16 = scalar_lea.hbm %s1094_s15, 128 }
  0x34   : > { %s1252_s25 = scalar_select %p1085_p7, 1, 0 }
  0x35   : > { %p813_p9 = scmp.ne.s32.totalorder %s1094_s15, %s812_s16  ;;  %s817_s11 = scalar_lea.hbm %s1238_s1, 256 }
  0x36   : > { %p818_p3 = scmp.lt.u32.totalorder %s1094_s15, %s1238_s1  ;;  %p819_p6 = scmp.lt.u32.totalorder %s817_s11, %s812_s16 }
  0x37   : > { %p815_p11 = pnand %p813_p9, %p784_p5  ;;  %p821_p10 = scmp.lt.u32.totalorder %s812_s16, %s1094_s15 }
  0x38   : > { %p820_p4 = por %p819_p6, %p818_p3 }
  0x39   : > { %p816_p13 = pneg %p815_p11 }
  0x3a   : > { %p822_p12 = por %p821_p10, %p820_p4 }
  0x3c   : > { %p823_p1 = pnand %p822_p12, %p816_p13 }
  0x3e   : > { %826 = shalt.err (!%p823_p1)
}
  0x3f   : > { %s827_s9 = scalar_lea.vmem %s246_s29, 128  ;;  %s931_s10 = smov [#allocation5]  }
  0x40   : > { %p828_p2 = scmp.ne.s32.totalorder %s246_s29, %s827_s9  ;;  %s832_s27 = sshll.u32 %s931_s10, 4  ;;  %s833_s27 = int_to_ptr.vmem [resolvable:$false] %s832_s27 }
  0x41   : > { %s834_s24 = scalar_lea.vmem %s833_s27, 256  ;;  %p835_p8 = scmp.lt.s32.totalorder %s246_s29, %s833_s27 }
  0x42   : > { %p830_p9 = pnand %p828_p2, %p784_p5  ;;  %p836_p7 = scmp.lt.s32.totalorder %s834_s24, %s827_s9 }
  0x44   : > { %p831_p11 = pneg %p830_p9  ;;  %p837_p3 = por %p836_p7, %p835_p8 }
  0x46   : > { %p838_p6 = pnand %p837_p3, %p831_p11 }
  0x48   : > { %841 = shalt.err (!%p838_p6)
}
  0x49   : > { %708 = dma.hbm_to_vmem [thread:$0]  (!%p1049_p0), %s1094_s15, 128, %s246_s29, %s232_s14  }
  0x4a   : > { %p1253_p13 = scmp.ne.s32.totalorder %s1252_s25, 0 }
  0x4b   : > { %s1121_s16 = sand.u32 (!%p1253_p13), 1, %s912_s19   ;;  %p1254_p8 = scmp.ne.s32.totalorder (!%p1253_p13), %s1246_s30, 0 }
  0x4c   : > { %254 = sbr.rel (%p1253_p13) target bundleno = 286 (0x11e), region = 40  ;;  %s1124_s12 = sshll.u32 (!%p1253_p13), %s1121_s16, 3 }
  0x4d   : > { %s257_s11 = scalar_lea.sflag (!%p1253_p13), [#allocation3], %s1121_s16  ;;  %s260_s28 = scalar_lea.vmem (!%p1253_p13), [#allocation2], %s1124_s12 }
  0x53   : > { %895 = dma.done.wait (%p1254_p8), %s257_s11, 128  }
  0x54   : > { %897 = vsyncadd (%p1254_p8), %s257_s11, 4294967168  ;;  %s266_s17 = scalar_lea.sflag [#allocation6], %s1121_s16  ;;  %s269_s25 = scalar_lea.vmem [#allocation5], %s1124_s12 }
  0x55   : > { %899 = dma.done.wait (%p1254_p8), %s266_s17, 128  }
  0x56   : > { %901 = vsyncadd (%p1254_p8), %s266_s17, 4294967168  ;;  %v932_v0 = vmov 0   ;;  %v307_v1 = vld [vmem:[%s1240_s3] sm:$0xf]  ;;  %v933_v4 = vmov 1   ;;  %v934_v5 = vmov 2   ;;  %v320_v7 = vlaneseq }
  0x57   : > { %768 = vset.pattern.permute.xlu1 %v932_v0  ;;  %767 = vset.pattern.permute.xlu0 %v932_v0  ;;  %v306_v2 = vld [vmem:[%s1239_s2] sm:$0xf]  ;;  %v935_v6 = vmov 3   ;;  %v1159_v14 = vld [vmem:[%s269_s25] sm:$0xff]  ;;  %s695_s30 = sshll.u32 %s920_s21, 7  ;;  %s300_s27 = scalar_lea.vmem [#allocation7], %s1124_s12 }
  0x58   : > { %344 = vperm.xlu1 %768, %v307_v1   ;;  %316 = vperm.xlu0 %767, %v306_v2   ;;  %v308_v3 = vld [vmem:[%s1241_s4] sm:$0xf]  ;;  %v1147_v8 = vshrl.u32 %v320_v7, 7  ;;  %s562_s24 = sshll.u32 %s300_s27, 4  ;;  %s1188_s17 = scalar_lea.hbm %s1242_s5, %s695_s30  ;;  %s1190_s24 = int_to_ptr.vmem [resolvable:$true] %s562_s24 }
  0x59   : > { %v1151_v9 = vld [vmem:[%s260_s28] sm:$0xff]  ;;  %s546_s25 = scalar_lea.sflag [#allocation4], %s1121_s16  ;;  %s842_s15 = scalar_lea.vmem %s1190_s24, 128 }
  0x5a   : > { %v322_v10 = vsub.s32 0, %v1147_v8  ;;  %v326_v11 = vsub.s32 4, %v1147_v8  ;;  %v376_v15 = vsub.s32 1, %v1147_v8  ;;  %v380_v16 = vsub.s32 5, %v1147_v8  ;;  %p843_p0 = scmp.ne.s32.totalorder %s1190_s24, %s842_s15  ;;  %p1255_p5 = scmp.ne.s32.totalorder %s1247_s6, 0 }
  0x5b   : > { %v428_v17 = vsub.s32 2, %v1147_v8  ;;  %v432_v18 = vsub.s32 6, %v1147_v8  ;;  %v480_v37 = vsub.s32 3, %v1147_v8  ;;  %v484_v38 = vsub.s32 7, %v1147_v8  ;;  %s936_s21 = smov [#allocation7]  }
  0x5c   : > { %769 = vset.pattern.permute.xlu1 %v933_v4  ;;  %311 = vperm.xlu0 %767, %v308_v3   ;;  %v323_v12 = vrot.slane %v1151_v9, %v322_v10  ;;  %v327_v13 = vrot.slane %v1151_v9, %v326_v11  ;;  %v351_v19 = vrot.slane %v1159_v14, %v322_v10  ;;  %p844_p7 = pnand %p843_p0, %p1255_p5  ;;  %s846_s12 = sshll.u32 %s936_s21, 4  ;;  %s847_s12 = int_to_ptr.vmem [resolvable:$false] %s846_s12 }
  0x5d   : > { %371 = vperm.xlu1 %769, %v306_v2   ;;  %v355_v20 = vrot.slane %v1159_v14, %v326_v11  ;;  %v377_v23 = vrot.slane %v1151_v9, %v376_v15  ;;  %v381_v24 = vrot.slane %v1151_v9, %v380_v16  ;;  %v403_v27 = vrot.slane %v1159_v14, %v376_v15  ;;  %s848_s29 = scalar_lea.vmem %s847_s12, 256  ;;  %p849_p10 = scmp.lt.s32.totalorder %s1190_s24, %s847_s12 }
  0x5e   : > { %v333_v21 = vrot.slane %v323_v12, %v322_v10  ;;  %v337_v22 = vrot.slane %v327_v13, %v322_v10  ;;  %v407_v28 = vrot.slane %v1159_v14, %v380_v16  ;;  %v429_v29 = vrot.slane %v1151_v9, %v428_v17  ;;  %p845_p4 = pneg %p844_p7  ;;  %p850_p12 = scmp.lt.s32.totalorder %s848_s29, %s842_s15 }
  0x5f   : > { %v433_v30 = vrot.slane %v1151_v9, %v432_v18  ;;  %v361_v31 = vrot.slane %v351_v19, %v322_v10  ;;  %v365_v32 = vrot.slane %v355_v20, %v322_v10  ;;  %v387_v35 = vrot.slane %v377_v23, %v376_v15 }
  0x60   : > { %770 = vset.pattern.permute.xlu0 %v933_v4  ;;  %v391_v36 = vrot.slane %v381_v24, %v376_v15  ;;  %v413_v40 = vrot.slane %v403_v27, %v376_v15  ;;  %v417_v41 = vrot.slane %v407_v28, %v376_v15  ;;  %v439_v42 = vrot.slane %v429_v29, %v428_v17  ;;  %p851_p1 = por %p850_p12, %p849_p10 }
  0x61   : > { %771 = vset.pattern.permute.xlu1 %v934_v5  ;;  %397 = vperm.xlu0 %770, %v307_v1   ;;  %v443_v43 = vrot.slane %v433_v30, %v428_v17  ;;  %v455_v51 = vrot.slane %v1159_v14, %v428_v17  ;;  %v459_v52 = vrot.slane %v1159_v14, %v432_v18 }
  0x62   : > { %423 = vperm.xlu1 %771, %v306_v2   ;;  %v481_v55 = vrot.slane %v1151_v9, %v480_v37  ;;  %v485_v56 = vrot.slane %v1151_v9, %v484_v38  ;;  %v507_v7 = vrot.slane %v1159_v14, %v480_v37  ;;  %v511_v8 = vrot.slane %v1159_v14, %v484_v38  ;;  %p852_p2 = pnand %p851_p1, %p845_p4 }
  0x63   : > { %v465_v63 = vrot.slane %v455_v51, %v428_v17  ;;  %v469_v0 = vrot.slane %v459_v52, %v428_v17 }
  0x64   : > { %v491_v3 = vrot.slane %v481_v55, %v480_v37  ;;  %v495_v4 = vrot.slane %v485_v56, %v480_v37  ;;  %v517_v20 = vrot.slane %v507_v7, %v480_v37  ;;  %v521_v17 = vrot.slane %v511_v8, %v480_v37 }
  0x65   : > { %772 = vset.pattern.permute.xlu0 %v935_v6 }
  0x66   : > { %449 = vperm.xlu1 %771, %v307_v1   ;;  %475 = vperm.xlu0 %772, %v306_v2  }
  0x6a   : > { %773 = vset.pattern.permute.xlu1 %v935_v6 }
  0x6b   : > { %501 = vperm.xlu1 %773, %v307_v1  }
  0xd7   : > { %v345_v25 = vpop.permute.xlu1 %344  ;;  %v317_v26 = vpop.permute.xlu0 %316 }
  0xd8   : > { %v338_v33 = vmul.f32 %v333_v21, %v317_v26  ;;  %v339_v34 = vmul.f32 %v337_v22, %v317_v26  ;;  %v366_v44 = vmul.f32 %v361_v31, %v345_v25  ;;  %v367_v45 = vmul.f32 %v365_v32, %v345_v25 }
  0xdb   : > { %v312_v39 = vpop.permute.xlu0 %311 }
  0xdc   : > { %v340_v46 = vadd.f32 %v338_v33, %v312_v39  ;;  %v341_v47 = vadd.f32 %v339_v34, %v312_v39  ;;  %v372_v48 = vpop.permute.xlu1 %371 }
  0xdd   : > { %v392_v49 = vmul.f32 %v387_v35, %v372_v48  ;;  %v393_v50 = vmul.f32 %v391_v36, %v372_v48 }
  0xde   : > { %v368_v53 = vadd.f32 %v366_v44, %v340_v46  ;;  %v369_v54 = vadd.f32 %v367_v45, %v341_v47 }
  0xe0   : > { %v394_v57 = vadd.f32 %v392_v49, %v368_v53  ;;  %v395_v58 = vadd.f32 %v393_v50, %v369_v54  ;;  %v398_v59 = vpop.permute.xlu0 %397 }
  0xe1   : > { %v418_v60 = vmul.f32 %v413_v40, %v398_v59  ;;  %v419_v61 = vmul.f32 %v417_v41, %v398_v59  ;;  %v424_v62 = vpop.permute.xlu1 %423 }
  0xe2   : > { %v444_v1 = vmul.f32 %v439_v42, %v424_v62  ;;  %v445_v2 = vmul.f32 %v443_v43, %v424_v62 }
  0xe3   : > { %v420_v5 = vadd.f32 %v418_v60, %v394_v57  ;;  %v421_v6 = vadd.f32 %v419_v61, %v395_v58 }
  0xe5   : > { %v446_v10 = vadd.f32 %v444_v1, %v420_v5  ;;  %v447_v11 = vadd.f32 %v445_v2, %v421_v6  ;;  %v450_v12 = vpop.permute.xlu1 %449  ;;  %v476_v13 = vpop.permute.xlu0 %475 }
  0xe6   : > { %v470_v15 = vmul.f32 %v465_v63, %v450_v12  ;;  %v471_v16 = vmul.f32 %v469_v0, %v450_v12  ;;  %v496_v18 = vmul.f32 %v491_v3, %v476_v13  ;;  %v497_v19 = vmul.f32 %v495_v4, %v476_v13 }
  0xe8   : > { %v472_v21 = vadd.f32 %v470_v15, %v446_v10  ;;  %v473_v22 = vadd.f32 %v471_v16, %v447_v11 }
  0xea   : > { %v498_v23 = vadd.f32 %v496_v18, %v472_v21  ;;  %v499_v24 = vadd.f32 %v497_v19, %v473_v22  ;;  %v502_v25 = vpop.permute.xlu1 %501 }
  0xeb   : > { %v522_v26 = vmul.f32 %v517_v20, %v502_v25  ;;  %v523_v27 = vmul.f32 %v521_v17, %v502_v25 }
  0xed   : > { %v524_v28 = vadd.f32 %v522_v26, %v498_v23  ;;  %v525_v29 = vadd.f32 %v523_v27, %v499_v24 }
  0xef   : > { %v686_v30 = vmul.f32 -1.442695, %v524_v28  ;;  %v687_v31 = vmul.f32 -1.442695, %v525_v29 }
  0xf1   : > { %774 = vpow2.f32 %v686_v30 }
  0xf2   : > { %776 = vpow2.f32 %v687_v31 }
  0xfb   : > { %v775_v32 = vpop.eup %774 }
  0xfc   : > { %v777_v33 = vpop.eup %776  ;;  %v532_v34 = vadd.f32 1.0, %v775_v32 }
  0xfd   : > { %v533_v35 = vadd.f32 1.0, %v777_v33 }
  0xfe   : > { %778 = vrcp.f32 %v532_v34 }
  0xff   : > { %780 = vrcp.f32 %v533_v35 }
 0x108   : > { %v779_v36 = vpop.eup %778 }
 0x109   : > { %v781_v37 = vpop.eup %780 }
 0x10a   : > { %v540_v38 = vcombine.low %v779_v36, %v781_v37 }
 0x10c   : > { %v542_v39 = vmul.f32 %v540_v38, %v1159_v14 }
 0x10e   : > { %v543_v40 = vadd.f32 %v542_v39, %v1151_v9 }
 0x110   : > { %544 = vst [vmem:[%s300_s27] sm:$0xff] %v543_v40 }
 0x111   : > { %855 = shalt.err (!%p852_p2)
}
 0x112   : > { %s856_s16 = scalar_lea.hbm %s1188_s17, 128  ;;  %s860_s9 = scalar_lea.hbm %s1242_s5, 256 }
 0x113   : > { %p857_p9 = scmp.ne.s32.totalorder %s1188_s17, %s856_s16  ;;  %p861_p6 = scmp.lt.u32.totalorder %s1188_s17, %s1242_s5 }
 0x114   : > { %p862_p13 = scmp.lt.u32.totalorder %s860_s9, %s856_s16  ;;  %p864_p0 = scmp.lt.u32.totalorder %s856_s16, %s1188_s17 }
 0x115   : > { %p858_p11 = pnand %p857_p9, %p1255_p5 }
 0x116   : > { %p863_p8 = por %p862_p13, %p861_p6 }
 0x117   : > { %p859_p3 = pneg %p858_p11 }
 0x118   : > { %p865_p7 = por %p864_p0, %p863_p8 }
 0x11a   : > { %p866_p4 = pnand %p865_p7, %p859_p3 }
 0x11c   : > { %869 = shalt.err (!%p866_p4)
}
 0x11d   : > { %700 = dma.vmem_to_hbm [thread:$0]  (%p1255_p5), %s1190_s24, 128, %s1188_s17, %s546_s25  }
 0x11e PF: > { %s574_s27 = sand.u32 1, %s908_s18   ;;  %p1256_p10 = scmp.ne.s32.totalorder %s1248_s8, 0 }
 0x11f   : > { %p1257_p12 = scmp.ge.s32.totalorder %s928_s23, 2  ;;  %s575_s11 = scalar_lea.sflag [#allocation4], %s574_s27 }
 0x121   : > { %p710_p1 = pnand %p1257_p12, %p1256_p10 }
 0x123   : > { %903 = dma.done.wait (!%p710_p1), %s575_s11, 128  }
 0x124   : > { %905 = vsyncadd (!%p710_p1), %s575_s11, 4294967168  ;;  %s24_s23 = sadd.s32 1, %s928_s23   ;;  %s1258_s18 = smov %s912_s19 }
 0x125   : > { %p21_p2 = scmp.ge.s32.totalorder %s24_s23, 4   ;;  %s1259_s19 = smov %s916_s20 }
 0x126   : > { %s1260_s20 = smov %s1023_s7  ;;  %s1261_s21 = smov %s924_s22 }
 0x127   : > { %s1262_s22 = smov %s1264_s26  ;;  %23 = sbr.rel (!%p21_p2) target bundleno = 8 (0x8), region = 98 }
 0x12e   :  { %580 = vsyncpa [#allocation3], 1 }
 0x12f   :  { %582 = vsyncpa [#allocation3 + $0x1], 1 }
 0x130   :  { %583 = vsyncpa [#allocation6], 1 }
 0x131   :  { %585 = vsyncpa [#allocation6 + $0x1], 1 }
 0x132   :  { %586 = vsyncpa [#allocation4], 1 }
 0x133   :  { %588 = vsyncpa [#allocation4 + $0x1], 1 }

</bundles_post_ra>
